<compile_context>
chip_gen: v7x
topology: tpu7x:2x2x1
jax: 0.10.0
libtpu: 0.0.40
codegen_flags: <defaults>
</compile_context>

<pallas_src>
import functools

import jax
import jax.numpy as jnp
from jax.experimental import pallas as pl
from jax.experimental.pallas import tpu as pltpu


def _round_up(v, m):
    return ((v + m - 1) // m) * m


def _spatial_attention_kernel(x_ref, wm_ref, o_ref, avg_sc, max_sc, *, W, k, lane_pad):
    # x_ref : (Bt, C, N) input block, N = H*W                      (VMEM)
    # wm_ref: (2, k*k, N) per-tap  conv_weight * validity  planes  (VMEM)
    # o_ref : (Bt, C, N) output block                              (VMEM)
    # avg_sc/max_sc: (Bt, lane_pad + N + lane_pad) f32 scratch. Pooled maps are
    #   parked at lane offset `lane_pad` (128-aligned store) with zero margins,
    #   so every conv tap is a plain static-window load.
    Bt, C, N = x_ref.shape
    pad = k // 2
    L = lane_pad

    x = x_ref[...].astype(jnp.float32)                  # (Bt, C, N)

    # Channel pooling: VPU elementwise reductions over the non-minor C axis.
    avg = jnp.mean(x, axis=1)                           # (Bt, N)
    mx = jnp.max(x, axis=1)                             # (Bt, N)

    # Zero the margins and park the pooled maps (aligned stores).  Zeroing every
    # step keeps each TensorCore's scratch valid under the parallel batch axis.
    avg_sc[...] = jnp.zeros_like(avg_sc)
    max_sc[...] = jnp.zeros_like(max_sc)
    avg_sc[:, L:L + N] = avg
    max_sc[:, L:L + N] = mx

    # 2-in / 1-out kxk conv over the flattened spatial grid: k*k shifted-window
    # taps; zero padding + flat row-wrap are handled by the weight planes.
    wm = wm_ref[...]                                    # (2, k*k, N) f32
    acc = jnp.zeros((Bt, N), jnp.float32)
    for i in range(k):                                  # fully unrolled, k*k <= 49 taps
        for j in range(k):
            t = i * k + j
            off = (i - pad) * W + (j - pad)
            acc = acc + wm[0, t][None, :] * avg_sc[:, L + off:L + off + N]
            acc = acc + wm[1, t][None, :] * max_sc[:, L + off:L + off + N]

    gate = jax.nn.sigmoid(acc)                          # (Bt, N)

    # Apply the spatial gate to every channel (broadcast over C) in one store.
    o_ref[...] = (x * gate[:, None, :]).astype(o_ref.dtype)


def _pick_block_batch(B, C, N, itemsize):
    """Batch elems / grid step: amortize step overhead, cap VMEM, keep >=2 steps."""
    # TODO(synk): add channel tiling for feature maps too large for one VMEM block.
    per_b = C * N * (2 * 2 * itemsize + 4)              # 2x-buffered in+out + f32 working copy
    cap = 10 * 1024 * 1024                              # ~10 MiB/step -> v7x (64 MiB VMEM) safe
    max_bt = max(1, cap // max(per_b, 1))
    if B >= 2:
        max_bt = min(max_bt, max(1, B // 2))            # >= 2 grid steps for v7x's 2 TensorCores
    bt = 1
    for d in range(1, B + 1):
        if B % d == 0 and d <= max_bt:
            bt = d
    return bt


def spatial_attention(x, conv_w, *, batch_first=True, block_batch=None,
                      vmem_limit_bytes=48 * 1024 * 1024):
    """x: (B, C, H, W); conv_w: (1, 2, k, k) = Conv2d(2,1,k,padding=k//2,bias=False).weight."""
    if not batch_first:
        x = jnp.transpose(x, (1, 0, 2, 3))
    B, C, H, W = x.shape
    assert conv_w.ndim == 4 and conv_w.shape[:2] == (1, 2)
    k = conv_w.shape[2]
    assert conv_w.shape[3] == k and k % 2 == 1 and k in (3, 5, 7)
    pad = k // 2
    N = H * W

    # Per-tap (conv_weight * in-bounds validity) planes over the flattened H*W
    # grid.  They fold the conv's zero padding and the flat-layout row wrap
    # into data, so the in-kernel conv is just shifted loads + FMAs on the VPU.
    rows = jnp.arange(N, dtype=jnp.int32) // W
    cols = jnp.arange(N, dtype=jnp.int32) - rows * W
    w = conv_w.reshape(2, k, k).astype(jnp.float32)      # [cin, i, j]
    planes = []
    for i in range(k):
        for j in range(k):
            di, dj = i - pad, j - pad
            valid = ((rows + di >= 0) & (rows + di < H) &
                     (cols + dj >= 0) & (cols + dj < W)).astype(jnp.float32)
            planes.append(jnp.stack([w[0, i, j] * valid, w[1, i, j] * valid]))
    wm = jnp.stack(planes, axis=1)                        # (2, k*k, N)

    # Flat lane-dense view of x (free contiguous reshape).
    x_flat = x.reshape(B, C, N)

    Bt = block_batch if block_batch is not None else _pick_block_batch(
        B, C, N, x.dtype.itemsize)
    assert B % Bt == 0

    margin = pad * W + pad                                # max |tap offset| in flat space
    lane_pad = _round_up(max(margin, 1), 128)             # 128-aligned parking offset
    n_scratch = N + 2 * lane_pad

    kernel = functools.partial(_spatial_attention_kernel, W=W, k=k, lane_pad=lane_pad)

    out = pl.pallas_call(
        kernel,
        out_shape=jax.ShapeDtypeStruct((B, C, N), x.dtype),
        grid_spec=pltpu.PrefetchScalarGridSpec(
            num_scalar_prefetch=0,
            grid=(B // Bt,),
            in_specs=[
                # last two block dims equal the full array dims -> legal for any C, N
                pl.BlockSpec((Bt, C, N), lambda b: (b, 0, 0)),
                pl.BlockSpec((2, k * k, N), lambda b: (0, 0, 0)),
            ],
            out_specs=pl.BlockSpec((Bt, C, N), lambda b: (b, 0, 0)),
            scratch_shapes=[
                pltpu.VMEM((Bt, n_scratch), jnp.float32),
                pltpu.VMEM((Bt, n_scratch), jnp.float32),
            ],
        ),
        compiler_params=pltpu.CompilerParams(
            dimension_semantics=("parallel",),
            vmem_limit_bytes=vmem_limit_bytes,
        ),
    )(x_flat, wm)

    out = out.reshape(B, C, H, W)
    if not batch_first:
        out = jnp.transpose(out, (1, 0, 2, 3))
    return out


def _reference(x, conv_w):
    # Plain-JAX reference of the PyTorch SpatialAttention forward (batch_first=True).
    avg = jnp.mean(x, axis=1, keepdims=True)
    mx = jnp.max(x, axis=1, keepdims=True)
    x1 = jnp.concatenate([avg, mx], axis=1)                     # (B, 2, H, W)
    pad = conv_w.shape[2] // 2
    y = jax.lax.conv_general_dilated(
        x1, conv_w, window_strides=(1, 1),
        padding=((pad, pad), (pad, pad)),
        dimension_numbers=("NCHW", "OIHW", "NCHW"))             # (B, 1, H, W)
    return x * jax.nn.sigmoid(y)


if __name__ == "__main__":
    B, C, H, W = 2, 4, 16, 16
    kernel_size = 3

    key = jax.random.PRNGKey(0)
    kx, kw = jax.random.split(key)
    x = jax.random.normal(kx, (B, C, H, W), dtype=jnp.float32)
    # nn.Conv2d(2, 1, 3, padding=1, bias=False).weight -> shape (1, 2, 3, 3)
    conv_w = jax.random.normal(kw, (1, 2, kernel_size, kernel_size),
                               dtype=jnp.float32) * 0.2

    out = jax.block_until_ready(spatial_attention(x, conv_w))
    ref = _reference(x, conv_w)

    assert out.shape == (B, C, H, W)
    assert jnp.allclose(out, ref, atol=1e-5, rtol=1e-5), "mismatch vs reference"
    print("KERNEL_OK")
</pallas_src>

<mosaic_0001>
module attributes {stable_mosaic.version = 11 : i64} {
  func.func @_spatial_attention_kernel(%arg0: i32, %arg1: memref<1x4x256xf32, #tpu.memory_space<vmem>>, %arg2: memref<2x9x256xf32, #tpu.memory_space<vmem>>, %arg3: memref<1x4x256xf32, #tpu.memory_space<vmem>>, %arg4: memref<1x512xf32, #tpu.memory_space<vmem>>, %arg5: memref<1x512xf32, #tpu.memory_space<vmem>>) attributes {dimension_semantics = [#tpu.dimension_semantics<parallel>], iteration_bounds = array<i64: 2>, scalar_prefetch = 0 : i64, scratch_operands = 2 : i64, tpu.core_type = #tpu.core_type<tc>, window_params = [{transform_indices = @transform_0, window_bounds = array<i64: 1, 4, 256>}, {pipeline_mode = #tpu.pipeline_mode<synchronous>, transform_indices = @transform_1, window_bounds = array<i64: 2, 9, 256>}, {transform_indices = @transform_2, window_bounds = array<i64: 1, 4, 256>}]} {
    %c0 = arith.constant 0 : index
    %c0_0 = arith.constant 0 : index
    %c0_1 = arith.constant 0 : index
    %0 = vector.load %arg1[%c0, %c0_0, %c0_1] : memref<1x4x256xf32, #tpu.memory_space<vmem>>, vector<1x4x256xf32>
    %cst = arith.constant dense<0.000000e+00> : vector<1x256xf32>
    %1 = vector.multi_reduction <add>, %0, %cst [1] : vector<1x4x256xf32> to vector<1x256xf32>
    %cst_2 = arith.constant 4.000000e+00 : f32
    %2 = vector.broadcast %cst_2 : f32 to vector<1x256xf32>
    %3 = arith.divf %1, %2 : vector<1x256xf32>
    %cst_3 = arith.constant dense<0xFF800000> : vector<1x256xf32>
    %4 = vector.multi_reduction <maximumf>, %0, %cst_3 [1] : vector<1x4x256xf32> to vector<1x256xf32>
    %cst_4 = arith.constant 0.000000e+00 : f32
    %5 = vector.broadcast %cst_4 : f32 to vector<1x512xf32>
    %c0_5 = arith.constant 0 : index
    %c0_6 = arith.constant 0 : index
    %6 = vector.load %arg4[%c0_5, %c0_6] : memref<1x512xf32, #tpu.memory_space<vmem>>, vector<1x512xf32>
    tpu.vector_store %arg4[%c0_5, %c0_6], %5 {strides = array<i32>} : memref<1x512xf32, #tpu.memory_space<vmem>>, vector<1x512xf32>,
    %cst_7 = arith.constant 0.000000e+00 : f32
    %7 = vector.broadcast %cst_7 : f32 to vector<1x512xf32>
    %c0_8 = arith.constant 0 : index
    %c0_9 = arith.constant 0 : index
    %8 = vector.load %arg5[%c0_8, %c0_9] : memref<1x512xf32, #tpu.memory_space<vmem>>, vector<1x512xf32>
    tpu.vector_store %arg5[%c0_8, %c0_9], %7 {strides = array<i32>} : memref<1x512xf32, #tpu.memory_space<vmem>>, vector<1x512xf32>,
    %c0_10 = arith.constant 0 : index
    %c128 = arith.constant 128 : index
    %9 = vector.load %arg4[%c0_10, %c128] : memref<1x512xf32, #tpu.memory_space<vmem>>, vector<1x256xf32>
    tpu.vector_store %arg4[%c0_10, %c128], %3 {strides = array<i32>} : memref<1x512xf32, #tpu.memory_space<vmem>>, vector<1x256xf32>,
    %c0_11 = arith.constant 0 : index
    %c128_12 = arith.constant 128 : index
    %10 = vector.load %arg5[%c0_11, %c128_12] : memref<1x512xf32, #tpu.memory_space<vmem>>, vector<1x256xf32>
    tpu.vector_store %arg5[%c0_11, %c128_12], %4 {strides = array<i32>} : memref<1x512xf32, #tpu.memory_space<vmem>>, vector<1x256xf32>,
    %c0_13 = arith.constant 0 : index
    %c0_14 = arith.constant 0 : index
    %c0_15 = arith.constant 0 : index
    %11 = vector.load %arg2[%c0_13, %c0_14, %c0_15] : memref<2x9x256xf32, #tpu.memory_space<vmem>>, vector<2x9x256xf32>
    %cst_16 = arith.constant 0.000000e+00 : f32
    %12 = vector.broadcast %cst_16 : f32 to vector<1x256xf32>
    %13 = vector.extract_strided_slice %11 {offsets = [0, 0, 0], sizes = [1, 1, 256], strides = [1, 1, 1]} : vector<2x9x256xf32> to vector<1x1x256xf32>
    %14 = vector.shape_cast %13 : vector<1x1x256xf32> to vector<256xf32>
    %15 = vector.shape_cast %14 : vector<256xf32> to vector<1x256xf32>
    %c0_17 = arith.constant 0 : index
    %c111 = arith.constant 111 : index
    %16 = vector.load %arg4[%c0_17, %c111] : memref<1x512xf32, #tpu.memory_space<vmem>>, vector<1x256xf32>
    %17 = arith.mulf %15, %16 : vector<1x256xf32>
    %18 = arith.addf %12, %17 : vector<1x256xf32>
    %19 = vector.extract_strided_slice %11 {offsets = [1, 0, 0], sizes = [1, 1, 256], strides = [1, 1, 1]} : vector<2x9x256xf32> to vector<1x1x256xf32>
    %20 = vector.shape_cast %19 : vector<1x1x256xf32> to vector<256xf32>
    %21 = vector.shape_cast %20 : vector<256xf32> to vector<1x256xf32>
    %c0_18 = arith.constant 0 : index
    %c111_19 = arith.constant 111 : index
    %22 = vector.load %arg5[%c0_18, %c111_19] : memref<1x512xf32, #tpu.memory_space<vmem>>, vector<1x256xf32>
    %23 = arith.mulf %21, %22 : vector<1x256xf32>
    %24 = arith.addf %18, %23 : vector<1x256xf32>
    %25 = vector.extract_strided_slice %11 {offsets = [0, 1, 0], sizes = [1, 1, 256], strides = [1, 1, 1]} : vector<2x9x256xf32> to vector<1x1x256xf32>
    %26 = vector.shape_cast %25 : vector<1x1x256xf32> to vector<256xf32>
    %27 = vector.shape_cast %26 : vector<256xf32> to vector<1x256xf32>
    %c0_20 = arith.constant 0 : index
    %c112 = arith.constant 112 : index
    %28 = vector.load %arg4[%c0_20, %c112] : memref<1x512xf32, #tpu.memory_space<vmem>>, vector<1x256xf32>
    %29 = arith.mulf %27, %28 : vector<1x256xf32>
    %30 = arith.addf %24, %29 : vector<1x256xf32>
    %31 = vector.extract_strided_slice %11 {offsets = [1, 1, 0], sizes = [1, 1, 256], strides = [1, 1, 1]} : vector<2x9x256xf32> to vector<1x1x256xf32>
    %32 = vector.shape_cast %31 : vector<1x1x256xf32> to vector<256xf32>
    %33 = vector.shape_cast %32 : vector<256xf32> to vector<1x256xf32>
    %c0_21 = arith.constant 0 : index
    %c112_22 = arith.constant 112 : index
    %34 = vector.load %arg5[%c0_21, %c112_22] : memref<1x512xf32, #tpu.memory_space<vmem>>, vector<1x256xf32>
    %35 = arith.mulf %33, %34 : vector<1x256xf32>
    %36 = arith.addf %30, %35 : vector<1x256xf32>
    %37 = vector.extract_strided_slice %11 {offsets = [0, 2, 0], sizes = [1, 1, 256], strides = [1, 1, 1]} : vector<2x9x256xf32> to vector<1x1x256xf32>
    %38 = vector.shape_cast %37 : vector<1x1x256xf32> to vector<256xf32>
    %39 = vector.shape_cast %38 : vector<256xf32> to vector<1x256xf32>
    %c0_23 = arith.constant 0 : index
    %c113 = arith.constant 113 : index
    %40 = vector.load %arg4[%c0_23, %c113] : memref<1x512xf32, #tpu.memory_space<vmem>>, vector<1x256xf32>
    %41 = arith.mulf %39, %40 : vector<1x256xf32>
    %42 = arith.addf %36, %41 : vector<1x256xf32>
    %43 = vector.extract_strided_slice %11 {offsets = [1, 2, 0], sizes = [1, 1, 256], strides = [1, 1, 1]} : vector<2x9x256xf32> to vector<1x1x256xf32>
    %44 = vector.shape_cast %43 : vector<1x1x256xf32> to vector<256xf32>
    %45 = vector.shape_cast %44 : vector<256xf32> to vector<1x256xf32>
    %c0_24 = arith.constant 0 : index
    %c113_25 = arith.constant 113 : index
    %46 = vector.load %arg5[%c0_24, %c113_25] : memref<1x512xf32, #tpu.memory_space<vmem>>, vector<1x256xf32>
    %47 = arith.mulf %45, %46 : vector<1x256xf32>
    %48 = arith.addf %42, %47 : vector<1x256xf32>
    %49 = vector.extract_strided_slice %11 {offsets = [0, 3, 0], sizes = [1, 1, 256], strides = [1, 1, 1]} : vector<2x9x256xf32> to vector<1x1x256xf32>
    %50 = vector.shape_cast %49 : vector<1x1x256xf32> to vector<256xf32>
    %51 = vector.shape_cast %50 : vector<256xf32> to vector<1x256xf32>
    %c0_26 = arith.constant 0 : index
    %c127 = arith.constant 127 : index
    %52 = vector.load %arg4[%c0_26, %c127] : memref<1x512xf32, #tpu.memory_space<vmem>>, vector<1x256xf32>
    %53 = arith.mulf %51, %52 : vector<1x256xf32>
    %54 = arith.addf %48, %53 : vector<1x256xf32>
    %55 = vector.extract_strided_slice %11 {offsets = [1, 3, 0], sizes = [1, 1, 256], strides = [1, 1, 1]} : vector<2x9x256xf32> to vector<1x1x256xf32>
    %56 = vector.shape_cast %55 : vector<1x1x256xf32> to vector<256xf32>
    %57 = vector.shape_cast %56 : vector<256xf32> to vector<1x256xf32>
    %c0_27 = arith.constant 0 : index
    %c127_28 = arith.constant 127 : index
    %58 = vector.load %arg5[%c0_27, %c127_28] : memref<1x512xf32, #tpu.memory_space<vmem>>, vector<1x256xf32>
    %59 = arith.mulf %57, %58 : vector<1x256xf32>
    %60 = arith.addf %54, %59 : vector<1x256xf32>
    %61 = vector.extract_strided_slice %11 {offsets = [0, 4, 0], sizes = [1, 1, 256], strides = [1, 1, 1]} : vector<2x9x256xf32> to vector<1x1x256xf32>
    %62 = vector.shape_cast %61 : vector<1x1x256xf32> to vector<256xf32>
    %63 = vector.shape_cast %62 : vector<256xf32> to vector<1x256xf32>
    %c0_29 = arith.constant 0 : index
    %c128_30 = arith.constant 128 : index
    %64 = vector.load %arg4[%c0_29, %c128_30] : memref<1x512xf32, #tpu.memory_space<vmem>>, vector<1x256xf32>
    %65 = arith.mulf %63, %64 : vector<1x256xf32>
    %66 = arith.addf %60, %65 : vector<1x256xf32>
    %67 = vector.extract_strided_slice %11 {offsets = [1, 4, 0], sizes = [1, 1, 256], strides = [1, 1, 1]} : vector<2x9x256xf32> to vector<1x1x256xf32>
    %68 = vector.shape_cast %67 : vector<1x1x256xf32> to vector<256xf32>
    %69 = vector.shape_cast %68 : vector<256xf32> to vector<1x256xf32>
    %c0_31 = arith.constant 0 : index
    %c128_32 = arith.constant 128 : index
    %70 = vector.load %arg5[%c0_31, %c128_32] : memref<1x512xf32, #tpu.memory_space<vmem>>, vector<1x256xf32>
    %71 = arith.mulf %69, %70 : vector<1x256xf32>
    %72 = arith.addf %66, %71 : vector<1x256xf32>
    %73 = vector.extract_strided_slice %11 {offsets = [0, 5, 0], sizes = [1, 1, 256], strides = [1, 1, 1]} : vector<2x9x256xf32> to vector<1x1x256xf32>
    %74 = vector.shape_cast %73 : vector<1x1x256xf32> to vector<256xf32>
    %75 = vector.shape_cast %74 : vector<256xf32> to vector<1x256xf32>
    %c0_33 = arith.constant 0 : index
    %c129 = arith.constant 129 : index
    %76 = vector.load %arg4[%c0_33, %c129] : memref<1x512xf32, #tpu.memory_space<vmem>>, vector<1x256xf32>
    %77 = arith.mulf %75, %76 : vector<1x256xf32>
    %78 = arith.addf %72, %77 : vector<1x256xf32>
    %79 = vector.extract_strided_slice %11 {offsets = [1, 5, 0], sizes = [1, 1, 256], strides = [1, 1, 1]} : vector<2x9x256xf32> to vector<1x1x256xf32>
    %80 = vector.shape_cast %79 : vector<1x1x256xf32> to vector<256xf32>
    %81 = vector.shape_cast %80 : vector<256xf32> to vector<1x256xf32>
    %c0_34 = arith.constant 0 : index
    %c129_35 = arith.constant 129 : index
    %82 = vector.load %arg5[%c0_34, %c129_35] : memref<1x512xf32, #tpu.memory_space<vmem>>, vector<1x256xf32>
    %83 = arith.mulf %81, %82 : vector<1x256xf32>
    %84 = arith.addf %78, %83 : vector<1x256xf32>
    %85 = vector.extract_strided_slice %11 {offsets = [0, 6, 0], sizes = [1, 1, 256], strides = [1, 1, 1]} : vector<2x9x256xf32> to vector<1x1x256xf32>
    %86 = vector.shape_cast %85 : vector<1x1x256xf32> to vector<256xf32>
    %87 = vector.shape_cast %86 : vector<256xf32> to vector<1x256xf32>
    %c0_36 = arith.constant 0 : index
    %c143 = arith.constant 143 : index
    %88 = vector.load %arg4[%c0_36, %c143] : memref<1x512xf32, #tpu.memory_space<vmem>>, vector<1x256xf32>
    %89 = arith.mulf %87, %88 : vector<1x256xf32>
    %90 = arith.addf %84, %89 : vector<1x256xf32>
    %91 = vector.extract_strided_slice %11 {offsets = [1, 6, 0], sizes = [1, 1, 256], strides = [1, 1, 1]} : vector<2x9x256xf32> to vector<1x1x256xf32>
    %92 = vector.shape_cast %91 : vector<1x1x256xf32> to vector<256xf32>
    %93 = vector.shape_cast %92 : vector<256xf32> to vector<1x256xf32>
    %c0_37 = arith.constant 0 : index
    %c143_38 = arith.constant 143 : index
    %94 = vector.load %arg5[%c0_37, %c143_38] : memref<1x512xf32, #tpu.memory_space<vmem>>, vector<1x256xf32>
    %95 = arith.mulf %93, %94 : vector<1x256xf32>
    %96 = arith.addf %90, %95 : vector<1x256xf32>
    %97 = vector.extract_strided_slice %11 {offsets = [0, 7, 0], sizes = [1, 1, 256], strides = [1, 1, 1]} : vector<2x9x256xf32> to vector<1x1x256xf32>
    %98 = vector.shape_cast %97 : vector<1x1x256xf32> to vector<256xf32>
    %99 = vector.shape_cast %98 : vector<256xf32> to vector<1x256xf32>
    %c0_39 = arith.constant 0 : index
    %c144 = arith.constant 144 : index
    %100 = vector.load %arg4[%c0_39, %c144] : memref<1x512xf32, #tpu.memory_space<vmem>>, vector<1x256xf32>
    %101 = arith.mulf %99, %100 : vector<1x256xf32>
    %102 = arith.addf %96, %101 : vector<1x256xf32>
    %103 = vector.extract_strided_slice %11 {offsets = [1, 7, 0], sizes = [1, 1, 256], strides = [1, 1, 1]} : vector<2x9x256xf32> to vector<1x1x256xf32>
    %104 = vector.shape_cast %103 : vector<1x1x256xf32> to vector<256xf32>
    %105 = vector.shape_cast %104 : vector<256xf32> to vector<1x256xf32>
    %c0_40 = arith.constant 0 : index
    %c144_41 = arith.constant 144 : index
    %106 = vector.load %arg5[%c0_40, %c144_41] : memref<1x512xf32, #tpu.memory_space<vmem>>, vector<1x256xf32>
    %107 = arith.mulf %105, %106 : vector<1x256xf32>
    %108 = arith.addf %102, %107 : vector<1x256xf32>
    %109 = vector.extract_strided_slice %11 {offsets = [0, 8, 0], sizes = [1, 1, 256], strides = [1, 1, 1]} : vector<2x9x256xf32> to vector<1x1x256xf32>
    %110 = vector.shape_cast %109 : vector<1x1x256xf32> to vector<256xf32>
    %111 = vector.shape_cast %110 : vector<256xf32> to vector<1x256xf32>
    %c0_42 = arith.constant 0 : index
    %c145 = arith.constant 145 : index
    %112 = vector.load %arg4[%c0_42, %c145] : memref<1x512xf32, #tpu.memory_space<vmem>>, vector<1x256xf32>
    %113 = arith.mulf %111, %112 : vector<1x256xf32>
    %114 = arith.addf %108, %113 : vector<1x256xf32>
    %115 = vector.extract_strided_slice %11 {offsets = [1, 8, 0], sizes = [1, 1, 256], strides = [1, 1, 1]} : vector<2x9x256xf32> to vector<1x1x256xf32>
    %116 = vector.shape_cast %115 : vector<1x1x256xf32> to vector<256xf32>
    %117 = vector.shape_cast %116 : vector<256xf32> to vector<1x256xf32>
    %c0_43 = arith.constant 0 : index
    %c145_44 = arith.constant 145 : index
    %118 = vector.load %arg5[%c0_43, %c145_44] : memref<1x512xf32, #tpu.memory_space<vmem>>, vector<1x256xf32>
    %119 = arith.mulf %117, %118 : vector<1x256xf32>
    %120 = arith.addf %114, %119 : vector<1x256xf32>
    %121 = arith.negf %120 : vector<1x256xf32>
    %122 = math.exp %121 : vector<1x256xf32>
    %cst_45 = arith.constant 1.000000e+00 : f32
    %123 = vector.broadcast %cst_45 : f32 to vector<1x256xf32>
    %124 = arith.addf %123, %122 : vector<1x256xf32>
    %125 = arith.divf %123, %124 : vector<1x256xf32>
    %126 = vector.shape_cast %125 : vector<1x256xf32> to vector<1x1x256xf32>
    %127 = vector.broadcast %126 : vector<1x1x256xf32> to vector<1x4x256xf32>
    %128 = arith.mulf %0, %127 : vector<1x4x256xf32>
    %c0_46 = arith.constant 0 : index
    %c0_47 = arith.constant 0 : index
    %c0_48 = arith.constant 0 : index
    %129 = vector.load %arg3[%c0_46, %c0_47, %c0_48] : memref<1x4x256xf32, #tpu.memory_space<vmem>>, vector<1x4x256xf32>
    tpu.vector_store %arg3[%c0_46, %c0_47, %c0_48], %128 {strides = array<i32>} : memref<1x4x256xf32, #tpu.memory_space<vmem>>, vector<1x4x256xf32>,
    return
  }
  func.func @transform_0(%arg0: i32) -> (i32, i32, i32) {
    %c0_i32 = arith.constant 0 : i32
    %c0_i32_0 = arith.constant 0 : i32
    %c0_i32_1 = arith.constant 0 : i32
    return %arg0, %c0_i32, %c0_i32_0 : i32, i32, i32
  }
  func.func @transform_1(%arg0: i32) -> (i32, i32, i32) {
    %c0_i32 = arith.constant 0 : i32
    %c0_i32_0 = arith.constant 0 : i32
    %c0_i32_1 = arith.constant 0 : i32
    %c0_i32_2 = arith.constant 0 : i32
    return %c0_i32, %c0_i32_0, %c0_i32_1 : i32, i32, i32
  }
  func.func @transform_2(%arg0: i32) -> (i32, i32, i32) {
    %c0_i32 = arith.constant 0 : i32
    %c0_i32_0 = arith.constant 0 : i32
    %c0_i32_1 = arith.constant 0 : i32
    return %arg0, %c0_i32, %c0_i32_0 : i32, i32, i32
  }
}

</mosaic_0001>

<bundles_post_ra>
// kernel: tpu_custom_call.1
= control target key start
LH: loop header
LB: loop body
LE: loop exit
PB: predicated region body
PF: predicated region fallthrough
CT: control target
= control target key end

     0   :  { %7 = vsyncpa [#allocation5], 0  ;;  %s1132_s0 = inlined_call_operand.vmem [shape: f32[2,4,256], index: 0, kind: input, shape index: {}]   ;;  %s1133_s1 = inlined_call_operand.vmem [shape: f32[2,9,256], index: 1, kind: input, shape index: {}]   ;;  %s1134_s2 = inlined_call_operand.hbm [shape: f32[2,4,256], index: 2, kind: output, shape index: {}]  }
   0x1   :  { %9 = vsyncpa [#allocation5 + $0x1], 0  ;;  %s900_s9 = smov 0   ;;  %s902_s10 = smov 0  }
   0x2   :  { %s904_s11 = smov 0   ;;  %s906_s12 = smov 0  }
   0x3 LB: > { %s921_s13 = sadd.s32 4294967295, %s872_s12   ;;  %s736_s14 = sadd.s32 4294967294, %s872_s12   ;;  %s872_s12 = sphi %s906_s12, %s1140_s12   ;;  %s868_s11 = sphi %s904_s11, %s1139_s11   ;;  %s864_s10 = sphi %s902_s10, %s1138_s10   ;;  %s860_s9 = sphi %s900_s9, %s1137_s9  }
   0x4   : > { %s925_s15 = sadd.s32 1, %s872_s12   ;;  %s69_s16 = sadd.s32 1, %s868_s11 }
   0x5   : > { %s66_s17 = ssub.s32 %s872_s12, %s925_s15  ;;  %p79_p0 = scmp.ne.s32.totalorder %s868_s11, %s864_s10 }
   0x6   : > { %p67_p1 = scmp.eq.s32.totalorder %s66_s17, 0  ;;  %p80_p2 = scmp.eq.s32.totalorder %s921_s13, 1 }
   0x7   : > { %p85_p3 = scmp.ne.s32.totalorder %s864_s10, %s860_s9  ;;  %p86_p4 = scmp.eq.s32.totalorder %s736_s14, 1 }
   0x8   : > { %s936_s18 = scalar_select %p67_p1, %s868_s11, %s69_s16  }
   0x9   : > { %p938_p5 = por %p80_p2, %p79_p0  ;;  %p942_p6 = por %p86_p4, %p85_p3 }
   0xa   : > { %p739_p7 = scmp.ge.s32.totalorder %s872_s12, 1  ;;  %p115_p8 = scmp.lt.s32.totalorder %s872_s12, 3 }
   0xc   : > { %p116_p9 = pnand %p739_p7, %p115_p8 }
   0xd   : > { %p137_p10 = scmp.lt.s32.totalorder (!%p116_p9), %s921_s13, 1  ;;  %v178_v0 = vlaneseq (!%p116_p9)  ;;  %v874_v1 = vmov (!%p116_p9), 0.0   ;;  %vm146_vm1 = vcmask (!%p116_p9), 1043456   ;;  %v875_v14 = vmov (!%p116_p9), 1966171168   ;;  %s876_s26 = smov (!%p116_p9), 17  }
   0xe   : > { %119 = sbr.rel (%p116_p9) target bundleno = 316 (0x13c), region = 28  ;;  %v188_v15 = vunpack.c.l.s4 (!%p116_p9), %v875_v14  ;;  %s877_s27 = smov (!%p116_p9), 16   ;;  %vm295_vm3 = vcmask (!%p116_p9), 130048   ;;  %vm252_vm4 = vcmask (!%p116_p9), 138240   ;;  %vm336_vm5 = vcmask (!%p116_p9), 121856  }
   0xf   : > { %vm180_vm0 = vcmp.lt.s32.totalorder (!%p116_p9), %v178_v0, 512  ;;  %v191_v25 = vshrl.u32 (!%p116_p9), %v178_v0, 7  ;;  %vm202_vm2 = vcmp.lt.s32.totalorder (!%p116_p9), %v178_v0, 256  ;;  %s878_s28 = smov (!%p116_p9), 15   ;;  %s879_s29 = smov (!%p116_p9), 1   ;;  %vm377_vm6 = vcmask (!%p116_p9), 7168  }
  0x10   : > { %183 = vst.msk [vmem:[#allocation3] sm:$0xf] (!%p116_p9), %vm180_vm0, %v874_v1  ;;  %182 = vst.msk [vmem:[#allocation2] sm:$0xf] (!%p116_p9), %vm180_vm0, %v874_v1  ;;  %v189_v24 = vunpack.c.0.s8 (!%p116_p9), %v188_v15  ;;  %s880_s30 = smov (!%p116_p9), 127   ;;  %s881_s3 = smov (!%p116_p9), 113  }
  0x11   : > { %v959_v45 = vsub.s32 (!%p116_p9), 1, %v191_v25  ;;  %v961_v46 = vsub.s32 (!%p116_p9), 0, %v191_v25  ;;  %v244_v47 = vsub.s32 (!%p116_p9), 2, %v191_v25  ;;  %s882_s4 = smov (!%p116_p9), 112   ;;  %s883_s5 = smov (!%p116_p9), 111   ;;  %vm476_vm7 = vcmask (!%p116_p9), 1039360  }
  0x12   : > { %v192_v35 = vsub.s32 (!%p116_p9), %v189_v24, %v191_v25  ;;  %vm531_vm8 = vcmask (!%p116_p9), 924672   ;;  %vm572_vm9 = vcmask (!%p116_p9), 916480   ;;  %vm613_vm10 = vcmask (!%p116_p9), 908288  }
  0x15   : > { %s138_s21 = scalar_select %p137_p10, %s921_s13, 1 }
  0x17   : > { %s750_s22 = sshll.u32 %s138_s21, 3 }
  0x18   : > { %s141_s25 = scalar_lea.vmem %s1132_s0, %s750_s22 }
  0x19   : > { %v953_v2 = vld [vmem:[%s141_s25] sm:$0xff] }
  0x1a   : > { %v144_v3 = vcombine.high %v953_v2, %v953_v2  ;;  %v164_v4 = vsel %vm146_vm1, %v953_v2, -inf  ;;  %v147_v5 = vsel %vm146_vm1, %v953_v2, 0.0 }
  0x1b   : > { %v165_v6 = vrot.slane %v164_v4, 4  ;;  %v148_v7 = vrot.slane %v147_v5, 4 }
  0x1c   : > { %v171_v8 = vsel %vm146_vm1, %v144_v3, -inf  ;;  %v154_v9 = vsel %vm146_vm1, %v144_v3, 0.0 }
  0x1d   : > { %v166_v10 = vmax.f32 %v164_v4, %v165_v6  ;;  %v172_v11 = vrot.slane %v171_v8, 4  ;;  %v149_v12 = vadd.f32 %v148_v7, %v147_v5  ;;  %v155_v13 = vrot.slane %v154_v9, 4 }
  0x1f   : > { %v167_v16 = vrot.slane %v166_v10, 2  ;;  %v173_v17 = vmax.f32 %v171_v8, %v172_v11  ;;  %v150_v18 = vrot.slane %v149_v12, 2  ;;  %v156_v19 = vadd.f32 %v155_v13, %v154_v9 }
  0x21   : > { %v168_v20 = vmax.f32 %v166_v10, %v167_v16  ;;  %v174_v21 = vrot.slane %v173_v17, 2  ;;  %v151_v22 = vadd.f32 %v150_v18, %v149_v12  ;;  %v157_v23 = vrot.slane %v156_v19, 2 }
  0x23   : > { %v169_v26 = vrot.slane %v168_v20, 1  ;;  %v175_v27 = vmax.f32 %v173_v17, %v174_v21  ;;  %v152_v28 = vrot.slane %v151_v22, 1  ;;  %v158_v29 = vadd.f32 %v157_v23, %v156_v19 }
  0x25   : > { %v170_v30 = vmax.f32 %v168_v20, %v169_v26  ;;  %v176_v31 = vrot.slane %v175_v27, 1  ;;  %v153_v32 = vadd.f32 %v152_v28, %v151_v22  ;;  %v159_v33 = vrot.slane %v158_v29, 1  ;;  %v977_v22 = vld [vmem:[%s1133_s1] sm:$0xff] }
  0x26   : > { %v985_v28 = vld [vmem:[%s1133_s1 + $0x20] sm:$0xff] }
  0x27   : > { %v177_v34 = vmax.f32 %v175_v27, %v176_v31  ;;  %v160_v36 = vadd.f32 %v159_v33, %v158_v29  ;;  %v162_v37 = vmul.f32 0.25, %v153_v32  ;;  %v992_v31 = vld [vmem:[%s1133_s1 + $0x8] sm:$0xff] }
  0x29   : > { %v207_v38 = vcombine.low %v170_v30, %v177_v34  ;;  %v163_v39 = vmul.f32 0.25, %v160_v36 }
  0x2b   : > { %v214_v40 = vrot.slane %v207_v38, %v192_v35  ;;  %v186_v41 = vcombine.low %v162_v37, %v163_v39  ;;  %v1001_v38 = vld [vmem:[%s1133_s1 + $0x28] sm:$0xff] }
  0x2d   : > { %v221_v42 = vrot.slane %v214_v40, %v192_v35  ;;  %v193_v43 = vrot.slane %v186_v41, %v192_v35 }
  0x2f   : > { %223 = vst.msk [vmem:[#allocation3 + $0x1] sm:$0x3] %vm202_vm2, %v221_v42  ;;  %v200_v44 = vrot.slane %v193_v43, %v192_v35 }
  0x31   : > { %204 = vst.msk [vmem:[#allocation2 + $0x1] sm:$0x3] %vm202_vm2, %v200_v44 }
  0x36   : > { %v261_v48 = vld [vmem:[#allocation3] sm:$0x7] }
  0x37   : > { %v270_v49 = vrot.slane %v261_v48, %v959_v45  ;;  %v266_v50 = vrot.slane %v261_v48, %v961_v46  ;;  %v274_v51 = vrot.slane %v261_v48, %v244_v47  ;;  %v491_v59 = vld [vmem:[#allocation3 + $0x1] sm:$0x7] }
  0x38   : > { %v232_v52 = vld [vmem:[#allocation2] sm:$0x7]  ;;  %v496_v60 = vrot.slane %v491_v59, %v961_v46  ;;  %v504_v62 = vrot.slane %v491_v59, %v244_v47  ;;  %v500_v63 = vrot.slane %v491_v59, %v959_v45 }
  0x39   : > { %277 = vrot.lane.b32.xlu0 %v270_v49, %s876_s26  ;;  %275 = vrot.lane.b32.xlu1 %v266_v50, %s876_s26  ;;  %v237_v53 = vrot.slane %v232_v52, %v961_v46  ;;  %v241_v54 = vrot.slane %v232_v52, %v959_v45  ;;  %v245_v55 = vrot.slane %v232_v52, %v244_v47  ;;  %v456_v56 = vld [vmem:[#allocation2 + $0x1] sm:$0x7] }
  0x3a   : > { %v465_v57 = vrot.slane %v456_v56, %v959_v45  ;;  %v461_v58 = vrot.slane %v456_v56, %v961_v46  ;;  %v469_v61 = vrot.slane %v456_v56, %v244_v47 }
  0x3d   : > { %312 = vrot.lane.b32.xlu0 %v270_v49, %s877_s27  ;;  %279 = vrot.lane.b32.xlu1 %v274_v51, %s876_s26 }
  0x41   : > { %353 = vrot.lane.b32.xlu0 %v270_v49, %s878_s28  ;;  %310 = vrot.lane.b32.xlu1 %v266_v50, %s877_s27 }
  0x45   : > { %314 = vrot.lane.b32.xlu1 %v274_v51, %s877_s27  ;;  %246 = vrot.lane.b32.xlu0 %v237_v53, %s876_s26 }
  0x49   : > { %351 = vrot.lane.b32.xlu1 %v266_v50, %s878_s28  ;;  %248 = vrot.lane.b32.xlu0 %v241_v54, %s876_s26 }
  0x4d   : > { %355 = vrot.lane.b32.xlu1 %v274_v51, %s878_s28  ;;  %289 = vrot.lane.b32.xlu0 %v237_v53, %s877_s27 }
  0x51   : > { %392 = vrot.lane.b32.xlu1 %v266_v50, %s879_s29  ;;  %293 = vrot.lane.b32.xlu0 %v245_v55, %s877_s27 }
  0x55   : > { %250 = vrot.lane.b32.xlu1 %v245_v55, %s876_s26  ;;  %330 = vrot.lane.b32.xlu0 %v237_v53, %s878_s28 }
  0x59   : > { %291 = vrot.lane.b32.xlu1 %v241_v54, %s877_s27  ;;  %334 = vrot.lane.b32.xlu0 %v245_v55, %s878_s28 }
  0x5d   : > { %332 = vrot.lane.b32.xlu1 %v241_v54, %s878_s28  ;;  %371 = vrot.lane.b32.xlu0 %v237_v53, %s879_s29 }
  0x61   : > { %373 = vrot.lane.b32.xlu1 %v241_v54, %s879_s29  ;;  %375 = vrot.lane.b32.xlu0 %v245_v55, %s879_s29 }
  0x65   : > { %396 = vrot.lane.b32.xlu1 %v274_v51, %s879_s29  ;;  %394 = vrot.lane.b32.xlu0 %v270_v49, %s879_s29 }
  0x69   : > { %472 = vrot.lane.b32.xlu1 %v465_v57, %s880_s30  ;;  %470 = vrot.lane.b32.xlu0 %v461_v58, %s880_s30 }
  0x6d   : > { %505 = vrot.lane.b32.xlu1 %v496_v60, %s880_s30  ;;  %474 = vrot.lane.b32.xlu0 %v469_v61, %s880_s30 }
  0x71   : > { %509 = vrot.lane.b32.xlu1 %v504_v62, %s880_s30  ;;  %507 = vrot.lane.b32.xlu0 %v500_v63, %s880_s30 }
  0x75   : > { %527 = vrot.lane.b32.xlu1 %v465_v57, %s881_s3  ;;  %525 = vrot.lane.b32.xlu0 %v461_v58, %s881_s3 }
  0x79   : > { %546 = vrot.lane.b32.xlu1 %v496_v60, %s881_s3  ;;  %529 = vrot.lane.b32.xlu0 %v469_v61, %s881_s3 }
  0x7d   : > { %550 = vrot.lane.b32.xlu1 %v504_v62, %s881_s3  ;;  %548 = vrot.lane.b32.xlu0 %v500_v63, %s881_s3  ;;  %s134_s3 = sand.u32 1, %s864_s10  }
  0x7e   : > { %s663_s17 = scalar_lea.sflag [#allocation5], %s134_s3 }
  0x81   : > { %568 = vrot.lane.b32.xlu1 %v465_v57, %s882_s4  ;;  %566 = vrot.lane.b32.xlu0 %v461_v58, %s882_s4 }
  0x85   : > { %587 = vrot.lane.b32.xlu1 %v496_v60, %s882_s4  ;;  %570 = vrot.lane.b32.xlu0 %v469_v61, %s882_s4 }
  0x89   : > { %591 = vrot.lane.b32.xlu1 %v504_v62, %s882_s4  ;;  %589 = vrot.lane.b32.xlu0 %v500_v63, %s882_s4  ;;  %s740_s4 = sshll.u32 %s134_s3, 3 }
  0x8a   : > { %s136_s6 = scalar_lea.vmem [#allocation4], %s740_s4 }
  0x8b   : > { %s677_s7 = sshll.u32 %s136_s6, 4  ;;  %s1092_s7 = int_to_ptr.vmem [resolvable:$true] %s677_s7 }
  0x8c   : > { %s810_s21 = scalar_lea.vmem %s1092_s7, 128 }
  0x8d   : > { %609 = vrot.lane.b32.xlu1 %v465_v57, %s883_s5  ;;  %607 = vrot.lane.b32.xlu0 %v461_v58, %s883_s5  ;;  %p811_p11 = scmp.ne.s32.totalorder %s1092_s7, %s810_s21 }
  0x8f   : > { %p812_p12 = pnand %p811_p11, %p938_p5 }
  0x91   : > { %622 = vrot.lane.b32.xlu1 %v496_v60, %s883_s5  ;;  %611 = vrot.lane.b32.xlu0 %v469_v61, %s883_s5  ;;  %p813_p13 = pneg %p812_p12 }
  0x95   : > { %626 = vrot.lane.b32.xlu1 %v504_v62, %s883_s5  ;;  %624 = vrot.lane.b32.xlu0 %v500_v63, %s883_s5  ;;  %s751_s5 = sshll.u32 %s921_s13, 7  ;;  %s884_s13 = smov [#allocation4]  }
  0x96   : > { %s1090_s16 = scalar_lea.hbm %s1134_s2, %s751_s5  ;;  %s814_s22 = sshll.u32 %s884_s13, 4  ;;  %s815_s22 = int_to_ptr.vmem [resolvable:$false] %s814_s22 }
  0x97   : > { %s816_s23 = scalar_lea.vmem %s815_s22, 256  ;;  %p817_p0 = scmp.lt.s32.totalorder %s1092_s7, %s815_s22 }
  0x98   : > { %p818_p1 = scmp.lt.s32.totalorder %s816_s23, %s810_s21 }
  0x9a   : > { %p819_p2 = por %p818_p1, %p817_p0 }
  0x9c   : > { %p820_p3 = pnand %p819_p2, %p813_p13 }
  0xab   : > { %v278_v0 = vpop.permute.xlu0 %277  ;;  %v276_v1 = vpop.permute.xlu1 %275 }
  0xac   : > { %v281_v29 = vsel %vm252_vm4, %v276_v1, %v278_v0 }
  0xad   : > { %v285_v37 = vmul.f32 %v281_v29, %v985_v28 }
  0xaf   : > { %v313_v3 = vpop.permute.xlu0 %312  ;;  %v280_v4 = vpop.permute.xlu1 %279 }
  0xb0   : > { %v282_v39 = vsel %vm252_vm4, %v278_v0, %v280_v4 }
  0xb1   : > { %v286_v48 = vmul.f32 %v282_v39, %v1001_v38 }
  0xb3   : > { %v971_v5 = vpop.permute.xlu0 %353  ;;  %v311_v6 = vpop.permute.xlu1 %310 }
  0xb4   : > { %v316_v33 = vsel %vm295_vm3, %v311_v6, %v313_v3 }
  0xb5   : > { %v320_v43 = vmul.f32 %v316_v33, %v985_v28 }
  0xb7   : > { %v315_v7 = vpop.permute.xlu1 %314  ;;  %v247_v8 = vpop.permute.xlu0 %246  ;;  %v324_v57 = vrot.slane %v320_v43, 1 }
  0xb8   : > { %v317_v44 = vsel %vm295_vm3, %v313_v3, %v315_v7 }
  0xb9   : > { %v321_v55 = vmul.f32 %v317_v44, %v1001_v38 }
  0xbb   : > { %v352_v9 = vpop.permute.xlu1 %351  ;;  %v249_v10 = vpop.permute.xlu0 %248  ;;  %v325_v1 = vrot.slane %v321_v55, 1 }
  0xbc   : > { %v253_v23 = vsel %vm252_vm4, %v247_v8, %v249_v10  ;;  %v357_v58 = vsel %vm336_vm5, %v352_v9, %v971_v5 }
  0xbd   : > { %v257_v30 = vmul.f32 %v253_v23, %v977_v22  ;;  %v361_v4 = vmul.f32 %v357_v58, %v985_v28 }
  0xbf   : > { %v356_v11 = vpop.permute.xlu1 %355  ;;  %v290_v12 = vpop.permute.xlu0 %289  ;;  %v287_v47 = vadd.f32 %v285_v37, %v257_v30 }
  0xc0   : > { %v358_v6 = vsel %vm336_vm5, %v971_v5, %v356_v11 }
  0xc3   : > { %v393_v13 = vpop.permute.xlu1 %392  ;;  %v294_v14 = vpop.permute.xlu0 %293 }
  0xc7   : > { %v251_v15 = vpop.permute.xlu1 %250  ;;  %v331_v16 = vpop.permute.xlu0 %330 }
  0xc8   : > { %v254_v32 = vsel %vm252_vm4, %v249_v10, %v251_v15  ;;  %v412_v10 = vld [vmem:[#allocation2 + $0x1] sm:$0x3] }
  0xc9   : > { %v258_v41 = vmul.f32 %v254_v32, %v992_v31  ;;  %v421_v32 = vrot.slane %v412_v10, %v959_v45 }
  0xcb   : > { %v292_v17 = vpop.permute.xlu1 %291  ;;  %v335_v18 = vpop.permute.xlu0 %334  ;;  %v288_v56 = vadd.f32 %v286_v48, %v258_v41 }
  0xcc   : > { %v296_v21 = vsel %vm295_vm3, %v290_v12, %v292_v17  ;;  %v297_v26 = vsel %vm295_vm3, %v292_v17, %v294_v14 }
  0xcd   : > { %v300_v27 = vmul.f32 %v296_v21, %v977_v22  ;;  %v301_v34 = vmul.f32 %v297_v26, %v992_v31 }
  0xcf   : > { %v333_v19 = vpop.permute.xlu1 %332  ;;  %v372_v20 = vpop.permute.xlu0 %371  ;;  %v304_v40 = vrot.slane %v300_v27, 1  ;;  %v305_v49 = vrot.slane %v301_v34, 1 }
  0xd0   : > { %v337_v42 = vsel %vm336_vm5, %v331_v16, %v333_v19  ;;  %v338_v53 = vsel %vm336_vm5, %v333_v19, %v335_v18  ;;  %v362_v18 = vmul.f32 %v358_v6, %v1001_v38  ;;  %v365_v19 = vrot.slane %v361_v4, 2 }
  0xd1   : > { %v308_v52 = vadd.f32 %v304_v40, %v287_v47  ;;  %v341_v54 = vmul.f32 %v337_v42, %v977_v22  ;;  %v309_v59 = vadd.f32 %v305_v49, %v288_v56  ;;  %v342_v60 = vmul.f32 %v338_v53, %v992_v31 }
  0xd2   : > { %v425_v42 = vmul.f32 %v421_v32, %v992_v31 }
  0xd3   : > { %v374_v24 = vpop.permute.xlu1 %373  ;;  %v376_v25 = vpop.permute.xlu0 %375  ;;  %v328_v63 = vadd.f32 %v324_v57, %v308_v52  ;;  %v345_v0 = vrot.slane %v341_v54, 2  ;;  %v329_v7 = vadd.f32 %v325_v1, %v309_v59  ;;  %v346_v8 = vrot.slane %v342_v60, 2 }
  0xd4   : > { %v378_v3 = vsel %vm377_vm6, %v372_v20, %v374_v24  ;;  %v379_v17 = vsel %vm377_vm6, %v374_v24, %v376_v25  ;;  %v417_v20 = vrot.slane %v412_v10, %v961_v46  ;;  %v366_v24 = vrot.slane %v362_v18, 2 }
  0xd5   : > { %v349_v15 = vadd.f32 %v345_v0, %v328_v63  ;;  %v382_v16 = vmul.f32 %v378_v3, %v977_v22  ;;  %v350_v11 = vadd.f32 %v346_v8, %v329_v7  ;;  %v383_v23 = vmul.f32 %v379_v17, %v992_v31 }
  0xd6   : > { %v424_v33 = vmul.f32 %v417_v20, %v977_v22  ;;  %v429_v55 = vrot.slane %v425_v42, 4 }
  0xd7   : > { %v397_v35 = vpop.permute.xlu1 %396  ;;  %v395_v36 = vpop.permute.xlu0 %394  ;;  %v369_v29 = vadd.f32 %v365_v19, %v349_v15  ;;  %v386_v30 = vrot.slane %v382_v16, 3  ;;  %v387_v37 = vrot.slane %v383_v23, 3 }
  0xd8   : > { %v398_v9 = vsel %vm377_vm6, %v393_v13, %v395_v36  ;;  %v399_v21 = vsel %vm377_vm6, %v395_v36, %v397_v35  ;;  %v434_v13 = vld [vmem:[#allocation3 + $0x1] sm:$0x3]  ;;  %v370_v36 = vadd.f32 %v366_v24, %v350_v11  ;;  %v428_v47 = vrot.slane %v424_v33, 4 }
  0xd9   : > { %v402_v5 = vmul.f32 %v398_v9, %v985_v28  ;;  %v403_v25 = vmul.f32 %v399_v21, %v1001_v38  ;;  %v439_v35 = vrot.slane %v434_v13, %v961_v46  ;;  %v390_v41 = vadd.f32 %v386_v30, %v369_v29 }
  0xda   : > { %v443_v43 = vrot.slane %v434_v13, %v959_v45  ;;  %v391_v52 = vadd.f32 %v387_v37, %v370_v36 }
  0xdb   : > { %v1009_v50 = vpop.permute.xlu1 %472  ;;  %v1011_v51 = vpop.permute.xlu0 %470  ;;  %v406_v34 = vrot.slane %v402_v5, 3  ;;  %v407_v44 = vrot.slane %v403_v25, 3  ;;  %v446_v49 = vmul.f32 %v439_v35, %v985_v28 }
  0xdc   : > { %v477_v56 = vsel %vm476_vm7, %v1011_v51, %v1009_v50  ;;  %v447_v57 = vmul.f32 %v443_v43, %v1001_v38 }
  0xdd   : > { %v410_v48 = vadd.f32 %v406_v34, %v390_v41  ;;  %v411_v58 = vadd.f32 %v407_v44, %v391_v52  ;;  %v450_v63 = vrot.slane %v446_v49, 4  ;;  %v481_v0 = vmul.f32 %v477_v56, %v977_v22 }
  0xde   : > { %v451_v10 = vrot.slane %v447_v57, 4 }
  0xdf   : > { %v506_v61 = vpop.permute.xlu1 %505  ;;  %v475_v62 = vpop.permute.xlu0 %474  ;;  %v432_v60 = vadd.f32 %v428_v47, %v410_v48  ;;  %v433_v8 = vadd.f32 %v429_v55, %v411_v58  ;;  %v485_v15 = vrot.slane %v481_v0, 5  ;;  %v226_v55 = vld [vmem:[%s1133_s1 + $0x10] sm:$0x1] }
  0xe0   : > { %v478_v45 = vsel %vm476_vm7, %v1009_v50, %v475_v62 }
  0xe1   : > { %v482_v6 = vmul.f32 %v478_v45, %v992_v31  ;;  %v454_v50 = vadd.f32 %v450_v63, %v432_v60  ;;  %v455_v23 = vadd.f32 %v451_v10, %v433_v8 }
  0xe3   : > { %v510_v12 = vpop.permute.xlu1 %509  ;;  %v508_v14 = vpop.permute.xlu0 %507  ;;  %v486_v17 = vrot.slane %v482_v6, 5  ;;  %v489_v11 = vadd.f32 %v485_v15, %v454_v50 }
  0xe4   : > { %v511_v59 = vsel %vm476_vm7, %v506_v61, %v508_v14  ;;  %v512_v1 = vsel %vm476_vm7, %v508_v14, %v510_v12 }
  0xe5   : > { %v515_v51 = vmul.f32 %v511_v59, %v985_v28  ;;  %v516_v61 = vmul.f32 %v512_v1, %v1001_v38  ;;  %v490_v25 = vadd.f32 %v486_v17, %v455_v23 }
  0xe7   : > { %v528_v26 = vpop.permute.xlu1 %527  ;;  %v526_v27 = vpop.permute.xlu0 %525  ;;  %v519_v18 = vrot.slane %v515_v51, 5  ;;  %v520_v13 = vrot.slane %v516_v61, 5 }
  0xe8   : > { %v532_v7 = vsel %vm531_vm8, %v526_v27, %v528_v26 }
  0xe9   : > { %v536_v12 = vmul.f32 %v532_v7, %v977_v22  ;;  %v523_v33 = vadd.f32 %v519_v18, %v489_v11  ;;  %v524_v41 = vadd.f32 %v520_v13, %v490_v25 }
  0xeb   : > { %v547_v39 = vpop.permute.xlu1 %546  ;;  %v530_v40 = vpop.permute.xlu0 %529  ;;  %v540_v27 = vrot.slane %v536_v12, 6 }
  0xec   : > { %v533_v62 = vsel %vm531_vm8, %v528_v26, %v530_v40 }
  0xed   : > { %v537_v21 = vmul.f32 %v533_v62, %v992_v31  ;;  %v544_v42 = vadd.f32 %v540_v27, %v523_v33 }
  0xef   : > { %v551_v53 = vpop.permute.xlu1 %550  ;;  %v549_v54 = vpop.permute.xlu0 %548  ;;  %v541_v36 = vrot.slane %v537_v21, 6 }
  0xf0   : > { %v552_v9 = vsel %vm531_vm8, %v547_v39, %v549_v54  ;;  %v553_v19 = vsel %vm531_vm8, %v549_v54, %v551_v53 }
  0xf1   : > { %v556_v5 = vmul.f32 %v552_v9, %v985_v28  ;;  %v557_v29 = vmul.f32 %v553_v19, %v1001_v38  ;;  %v545_v49 = vadd.f32 %v541_v36, %v524_v41 }
  0xf3   : > { %v569_v3 = vpop.permute.xlu1 %568  ;;  %v567_v4 = vpop.permute.xlu0 %566  ;;  %v560_v37 = vrot.slane %v556_v5, 6  ;;  %v561_v43 = vrot.slane %v557_v29, 6 }
  0xf4   : > { %v573_v20 = vsel %vm572_vm9, %v567_v4, %v569_v3  ;;  %v231_v4 = vld [vmem:[%s1133_s1 + $0x38] sm:$0x1] }
  0xf5   : > { %v577_v30 = vmul.f32 %v573_v20, %v977_v22  ;;  %v564_v52 = vadd.f32 %v560_v37, %v544_v42  ;;  %v565_v56 = vadd.f32 %v561_v43, %v545_v49 }
  0xf7   : > { %v588_v14 = vpop.permute.xlu1 %587  ;;  %v571_v16 = vpop.permute.xlu0 %570  ;;  %v581_v44 = vrot.slane %v577_v30, 7 }
  0xf8   : > { %v574_v26 = vsel %vm572_vm9, %v569_v3, %v571_v16  ;;  %v230_v3 = vld [vmem:[%s1133_s1 + $0x30] sm:$0x1] }
  0xf9   : > { %v578_v39 = vmul.f32 %v574_v26, %v992_v31  ;;  %v585_v57 = vadd.f32 %v581_v44, %v564_v52 }
  0xfb   : > { %v592_v32 = vpop.permute.xlu1 %591  ;;  %v590_v24 = vpop.permute.xlu0 %589  ;;  %v582_v53 = vrot.slane %v578_v39, 7 }
  0xfc   : > { %v593_v34 = vsel %vm572_vm9, %v588_v14, %v590_v24  ;;  %v594_v35 = vsel %vm572_vm9, %v590_v24, %v592_v32 }
  0xfd   : > { %v597_v40 = vmul.f32 %v593_v34, %v985_v28  ;;  %v598_v22 = vmul.f32 %v594_v35, %v1001_v38  ;;  %v227_v28 = vld [vmem:[%s1133_s1 + $0x18] sm:$0x1]  ;;  %v586_v60 = vadd.f32 %v582_v53, %v565_v56 }
  0xff   : > { %v610_v47 = vpop.permute.xlu1 %609  ;;  %v608_v48 = vpop.permute.xlu0 %607  ;;  %v601_v54 = vrot.slane %v597_v40, 7  ;;  %v602_v58 = vrot.slane %v598_v22, 7 }
 0x100   : > { %v614_v31 = vsel %vm613_vm10, %v608_v48, %v610_v47 }
 0x101   : > { %v605_v63 = vadd.f32 %v601_v54, %v585_v57  ;;  %v618_v0 = vmul.f32 %v614_v31, %v226_v55  ;;  %v606_v6 = vadd.f32 %v602_v58, %v586_v60 }
 0x103   : > { %v623_v38 = vpop.permute.xlu1 %622  ;;  %v612_v45 = vpop.permute.xlu0 %611  ;;  %v620_v50 = vadd.f32 %v618_v0, %v605_v63 }
 0x104   : > { %v615_v59 = vsel %vm613_vm10, %v610_v47, %v612_v45 }
 0x105   : > { %v619_v1 = vmul.f32 %v615_v59, %v227_v28 }
 0x107   : > { %v627_v51 = vpop.permute.xlu1 %626  ;;  %v625_v7 = vpop.permute.xlu0 %624  ;;  %v621_v61 = vadd.f32 %v619_v1, %v606_v6 }
 0x108   : > { %v628_v8 = vsel %vm613_vm10, %v623_v38, %v625_v7  ;;  %v629_v10 = vsel %vm613_vm10, %v625_v7, %v627_v51 }
 0x109   : > { %v632_v62 = vmul.f32 %v628_v8, %v230_v3  ;;  %v633_v9 = vmul.f32 %v629_v10, %v231_v4 }
 0x10b   : > { %v634_v15 = vadd.f32 %v632_v62, %v620_v50  ;;  %v635_v12 = vadd.f32 %v633_v9, %v621_v61 }
 0x10d   : > { %v743_v14 = vmul.f32 -1.442695, %v634_v15  ;;  %v744_v16 = vmul.f32 -1.442695, %v635_v12 }
 0x10f   : > { %802 = vpow2.f32 %v743_v14 }
 0x110   : > { %804 = vpow2.f32 %v744_v16 }
 0x119   : > { %v803_v17 = vpop.eup %802 }
 0x11a   : > { %v805_v18 = vpop.eup %804  ;;  %v642_v19 = vadd.f32 1.0, %v803_v17 }
 0x11b   : > { %v643_v20 = vadd.f32 1.0, %v805_v18 }
 0x11c   : > { %806 = vrcp.f32 %v642_v19 }
 0x11d   : > { %808 = vrcp.f32 %v643_v20 }
 0x126   : > { %v807_v21 = vpop.eup %806 }
 0x127   : > { %v809_v5 = vpop.eup %808  ;;  %v651_v11 = vrot.slane %v807_v21, %v961_v46 }
 0x128   : > { %v655_v23 = vrot.slane %v809_v5, %v961_v46 }
 0x12a   : > { %v658_v13 = vcombine.low %v651_v11, %v655_v23 }
 0x12c   : > { %v660_v26 = vmul.f32 %v658_v13, %v953_v2 }
 0x12e   : > { %661 = vst [vmem:[%s136_s6] sm:$0xff] %v660_v26 }
 0x12f   : > { %823 = shalt.err (!%p820_p3)
}
 0x130   : > { %s824_s24 = scalar_lea.hbm %s1090_s16, 128  ;;  %s828_s27 = scalar_lea.hbm %s1134_s2, 256 }
 0x131   : > { %p825_p4 = scmp.ne.s32.totalorder %s1090_s16, %s824_s24  ;;  %p829_p9 = scmp.lt.u32.totalorder %s1090_s16, %s1134_s2 }
 0x132   : > { %p830_p10 = scmp.lt.u32.totalorder %s828_s27, %s824_s24  ;;  %p832_p12 = scmp.lt.u32.totalorder %s824_s24, %s1090_s16 }
 0x133   : > { %p826_p7 = pnand %p825_p4, %p938_p5 }
 0x134   : > { %p831_p11 = por %p830_p10, %p829_p9 }
 0x135   : > { %p827_p8 = pneg %p826_p7 }
 0x136   : > { %p833_p13 = por %p832_p12, %p831_p11 }
 0x138   : > { %p834_p0 = pnand %p833_p13, %p827_p8 }
 0x13a   : > { %837 = shalt.err (!%p834_p0)
}
 0x13b   : > { %752 = dma.vmem_to_hbm [thread:$0]  (%p938_p5), %s1092_s7, 128, %s1090_s16, %s663_s17  }
 0x13c PF: > { %p758_p1 = scmp.ge.s32.totalorder %s872_s12, 2  ;;  %s689_s30 = sand.u32 1, %s860_s9  }
 0x13d   : > { %s690_s3 = scalar_lea.sflag [#allocation5], %s689_s30 }
 0x13e   : > { %p755_p2 = pnand %p758_p1, %p942_p6 }
 0x140   : > { %855 = dma.done.wait (!%p755_p2), %s690_s3, 128  }
 0x141   : > { %857 = vsyncadd (!%p755_p2), %s690_s3, 4294967168  ;;  %p12_p3 = scmp.ge.s32.totalorder %s925_s15, 4   ;;  %s1137_s9 = smov %s864_s10 }
 0x142   : > { %s1138_s10 = smov %s868_s11  ;;  %s1139_s11 = smov %s936_s18 }
 0x143   : > { %s1140_s12 = smov %s925_s15  ;;  %14 = sbr.rel (!%p12_p3) target bundleno = 3 (0x3), region = 63 }
 0x14a   :  { %695 = vsyncpa [#allocation5], 1 }
 0x14b   :  { %697 = vsyncpa [#allocation5 + $0x1], 1 }

</bundles_post_ra>
